<compile_context>
chip_gen: v6e
topology: v6e:2x2x1
jax: 0.10.0
libtpu: 0.0.40
codegen_flags: <defaults>
</compile_context>

<pallas_src>
import functools

import jax
import jax.numpy as jnp
from jax.experimental import pallas as pl
from jax.experimental.pallas import tpu as pltpu

_LANE = 128
_SUBLANE = 8


def _round_up(a: int, b: int) -> int:
    return (a + b - 1) // b * b


def _vmem_budget_bytes(frac: float = 0.8, fallback: int = 48 << 20) -> int:
    """~80% of physical per-core VMEM (leaves headroom for compiler-internal scratch)."""
    try:
        cap = int(pltpu.get_tpu_info().vmem_capacity_bytes)
        return int(cap * frac)
    except Exception:
        return fallback  # safe on v5e / v6e / v7x


def _predictor_kernel(x_ref, w_ref, b_ref, o_ref, acc_ref, *, log_softmax: bool):
    # x_ref: (tm, tk) native dtype; w_ref: (tk, n_out_pad) native dtype
    # b_ref: (1, n_out_pad) f32;    o_ref: (tm, n_out_pad); acc_ref: (tm, n_out_pad) f32.
    k = pl.program_id(1)

    @pl.when(k == 0)
    def _():
        acc_ref[...] = jnp.zeros_like(acc_ref)

    # MXU consumes the native operand dtype with f32 accumulation (no up-cast).
    acc_ref[...] += jnp.dot(x_ref[...], w_ref[...], preferred_element_type=jnp.float32)

    @pl.when(k == pl.num_programs(1) - 1)
    def _():
        # Epilogue reuses acc_ref in place -> only one live (tm, n_out_pad) f32 buffer.
        acc_ref[...] = acc_ref[...] + b_ref[...]                    # logits
        row_max = jnp.max(acc_ref[...], axis=-1, keepdims=True)
        acc_ref[...] = acc_ref[...] - row_max                       # shifted
        if log_softmax:
            s = jnp.sum(jnp.exp(acc_ref[...]), axis=-1, keepdims=True)
            o_ref[...] = (acc_ref[...] - jnp.log(s)).astype(o_ref.dtype)
        else:
            acc_ref[...] = jnp.exp(acc_ref[...])                    # e
            s = jnp.sum(acc_ref[...], axis=-1, keepdims=True)
            # EUP approx reciprocal (free slot) + 2 Newton steps (~f32 accuracy, hidden
            # under MXU/store slack).
            r = pl.reciprocal(s, approx=True)
            r = r * (2.0 - s * r)
            r = r * (2.0 - s * r)
            o_ref[...] = (acc_ref[...] * r).astype(o_ref.dtype)


class PallasSimplePredictor:
    """Pallas TPU implementation of SimplePredictor.forward.

    weight: [n_dim_in, n_dim_out]  (i.e. PyTorch nn.Linear weight transposed)
    bias:   [n_dim_out] or None
    """

    def __init__(self, weight, bias=None, *, log: bool = False,
                 block_m: int = 512, block_k: int = 1024, x_dtype=None):
        self.log = bool(log)
        self.n_in, self.n_out = weight.shape

        xb = jnp.dtype(x_dtype if x_dtype is not None else weight.dtype).itemsize
        wb = jnp.dtype(weight.dtype).itemsize

        budget = _vmem_budget_bytes()
        self.vmem_limit = budget

        n_out_pad = _round_up(self.n_out, _LANE)          # lane-dense output

        # ---- K tile: as large as possible; no K padding when n_in fits one tile.
        if self.n_in <= block_k:
            tk = self.n_in
            n_in_pad = self.n_in
        else:
            tk = block_k
            # Keep the double-buffered weight stream under ~half the VMEM budget.
            while tk > _LANE and 2 * tk * n_out_pad * wb > budget // 2:
                tk //= 2
            tk = max(tk, _LANE)
            n_in_pad = _round_up(self.n_in, tk)

        # ---- Largest M tile whose full resident footprint fits the budget.
        def footprint(tm):
            return (2 * tm * tk * xb                # x double buffer
                    + 2 * tk * n_out_pad * wb       # weight double buffer
                    + 2 * tm * n_out_pad * xb       # output double buffer
                    + 2 * n_out_pad * 4             # bias
                    + tm * n_out_pad * 4)           # f32 accumulator scratch

        tm_max = _round_up(max(block_m, _SUBLANE), _SUBLANE)
        while tm_max > _SUBLANE and footprint(tm_max) > budget:
            tm_max = _round_up(max(tm_max // 2, _SUBLANE), _SUBLANE)

        self.tk = tk
        self.n_in_pad = n_in_pad
        self.n_out_pad = n_out_pad
        self.tm_max = tm_max

        # ---- One-time (init-time) weight padding: zero rows for K pad, zero cols for N pad.
        w_p = weight
        if (n_in_pad, n_out_pad) != (self.n_in, self.n_out):
            w_p = jnp.pad(weight, ((0, n_in_pad - self.n_in), (0, n_out_pad - self.n_out)))
        self.w_p = w_p

        # Bias in f32 (epilogue compute dtype).  Padded logit columns get a huge negative
        # bias so exp() underflows to 0 and they never pollute the softmax sum.
        if bias is None:
            b_real = jnp.zeros((self.n_out,), dtype=jnp.float32)
        else:
            b_real = bias.astype(jnp.float32)
        b2d = jnp.full((1, n_out_pad), -1e30, dtype=jnp.float32)
        self.b2d = b2d.at[0, :self.n_out].set(b_real)

    def __call__(self, x):
        orig_shape = x.shape
        m = 1
        for d in orig_shape[:-1]:
            m *= d
        x2d = x.reshape(m, self.n_in)

        # K pad only (rare: n_in spans several K tiles and is not tile-aligned).
        # M is handled ragged by Pallas -- no row padding, no output row slice.
        if self.n_in_pad != self.n_in:
            x2d = jnp.pad(x2d, ((0, 0), (0, self.n_in_pad - self.n_in)))

        # >= 2 M blocks whenever possible so the "parallel" axis shards across v7x's 2 TCs.
        if m >= 2 * _SUBLANE:
            tm = min(self.tm_max, _round_up(pl.cdiv(m, 2), _SUBLANE))
        else:
            tm = min(self.tm_max, _round_up(max(m, 1), _SUBLANE))

        grid = (pl.cdiv(m, tm), self.n_in_pad // self.tk)

        out2d = pl.pallas_call(
            functools.partial(_predictor_kernel, log_softmax=self.log),
            out_shape=jax.ShapeDtypeStruct((m, self.n_out_pad), x.dtype),
            grid_spec=pltpu.PrefetchScalarGridSpec(
                num_scalar_prefetch=0,
                grid=grid,
                in_specs=[
                    pl.BlockSpec((tm, self.tk), lambda i, k: (i, k)),
                    pl.BlockSpec((self.tk, self.n_out_pad), lambda i, k: (k, 0)),
                    pl.BlockSpec((1, self.n_out_pad), lambda i, k: (0, 0)),
                ],
                out_specs=pl.BlockSpec((tm, self.n_out_pad), lambda i, k: (i, 0)),
                scratch_shapes=[pltpu.VMEM((tm, self.n_out_pad), jnp.float32)],
            ),
            compiler_params=pltpu.CompilerParams(
                dimension_semantics=("parallel", "arbitrary"),
                vmem_limit_bytes=self.vmem_limit,
            ),
        )(x2d, self.w_p, self.b2d)

        if self.n_out_pad != self.n_out:
            out2d = out2d[:, :self.n_out]
        return out2d.reshape(*orig_shape[:-1], self.n_out)


if __name__ == "__main__":
    # Small shapes consistent with the module: batch=2, seq=8, n_dim_in=32, n_dim_out=16.
    batch, seq, n_dim_in, n_dim_out = 2, 8, 32, 16

    key = jax.random.PRNGKey(0)
    kx, kw, kb = jax.random.split(key, 3)

    x = jax.random.normal(kx, (batch, seq, n_dim_in), dtype=jnp.float32)
    # Deterministic "nn.Linear"-style params (uniform in +/- 1/sqrt(fan_in)).
    bound = 1.0 / (n_dim_in ** 0.5)
    weight = jax.random.uniform(kw, (n_dim_in, n_dim_out), jnp.float32, -bound, bound)
    bias = jax.random.uniform(kb, (n_dim_out,), jnp.float32, -bound, bound)

    # Params padded once at "module init" (hoisted out of the forward path).
    pred_softmax = PallasSimplePredictor(weight, bias, log=False, x_dtype=x.dtype)
    pred_logsoft = PallasSimplePredictor(weight, bias, log=True, x_dtype=x.dtype)

    # softmax path
    y = pred_softmax(x)
    y = jax.block_until_ready(y)
    ref = jax.nn.softmax(jnp.einsum("bsi,io->bso", x, weight) + bias, axis=-1)
    assert y.shape == (batch, seq, n_dim_out)
    assert jnp.allclose(y, ref, atol=5e-4, rtol=5e-4)
    assert jnp.allclose(jnp.sum(y, axis=-1), 1.0, atol=1e-3)

    # log_softmax path
    yl = pred_logsoft(x)
    yl = jax.block_until_ready(yl)
    refl = jax.nn.log_softmax(jnp.einsum("bsi,io->bso", x, weight) + bias, axis=-1)
    assert yl.shape == (batch, seq, n_dim_out)
    assert jnp.allclose(yl, refl, atol=5e-4, rtol=5e-4)

    print("KERNEL_OK")
</pallas_src>

<mosaic_0001>
module attributes {stable_mosaic.version = 11 : i64} {
  func.func @_predictor_kernel(%arg0: i32, %arg1: i32, %arg2: memref<8x32xf32, #tpu.memory_space<vmem>>, %arg3: memref<32x128xf32, #tpu.memory_space<vmem>>, %arg4: memref<1x128xf32, #tpu.memory_space<vmem>>, %arg5: memref<8x128xf32, #tpu.memory_space<vmem>>, %arg6: memref<8x128xf32, #tpu.memory_space<vmem>>) attributes {dimension_semantics = [#tpu.dimension_semantics<parallel>, #tpu.dimension_semantics<arbitrary>], iteration_bounds = array<i64: 2, 1>, scalar_prefetch = 0 : i64, scratch_operands = 1 : i64, tpu.core_type = #tpu.core_type<tc>, window_params = [{transform_indices = @transform_0, window_bounds = array<i64: 8, 32>}, {transform_indices = @transform_1, window_bounds = array<i64: 32, 128>}, {pipeline_mode = #tpu.pipeline_mode<synchronous>, transform_indices = @transform_2, window_bounds = array<i64: 1, 128>}, {transform_indices = @transform_3, window_bounds = array<i64: 8, 128>}]} {
    %c0_i32 = arith.constant 0 : i32
    %0 = arith.cmpi eq, %arg1, %c0_i32 : i32
    %1 = arith.extui %0 : i1 to i32
    %c0_i32_0 = arith.constant 0 : i32
    %2 = arith.cmpi ne, %1, %c0_i32_0 : i32
    scf.if %2 {
      %cst_10 = arith.constant 0.000000e+00 : f32
      %12 = vector.broadcast %cst_10 : f32 to vector<8x128xf32>
      %c0_11 = arith.constant 0 : index
      %c0_12 = arith.constant 0 : index
      %13 = vector.load %arg6[%c0_11, %c0_12] : memref<8x128xf32, #tpu.memory_space<vmem>>, vector<8x128xf32>
      tpu.vector_store %arg6[%c0_11, %c0_12], %12 {strides = array<i32>} : memref<8x128xf32, #tpu.memory_space<vmem>>, vector<8x128xf32>,
    } else {
    }
    %c0 = arith.constant 0 : index
    %c0_1 = arith.constant 0 : index
    %3 = vector.load %arg6[%c0, %c0_1] : memref<8x128xf32, #tpu.memory_space<vmem>>, vector<8x128xf32>
    %c0_2 = arith.constant 0 : index
    %c0_3 = arith.constant 0 : index
    %4 = vector.load %arg2[%c0_2, %c0_3] : memref<8x32xf32, #tpu.memory_space<vmem>>, vector<8x32xf32>
    %c0_4 = arith.constant 0 : index
    %c0_5 = arith.constant 0 : index
    %5 = vector.load %arg3[%c0_4, %c0_5] : memref<32x128xf32, #tpu.memory_space<vmem>>, vector<32x128xf32>
    %cst = arith.constant dense<0.000000e+00> : vector<8x128xf32>
    %6 = tpu.matmul %4, %5, %cst {dimension_numbers = #tpu.dot_dimension_numbers<[1], [0], [0], [1], [0, 0, 1, 1], [], []>} : vector<8x32xf32>, vector<32x128xf32>, vector<8x128xf32> -> vector<8x128xf32>
    %7 = arith.addf %3, %6 : vector<8x128xf32>
    %c0_6 = arith.constant 0 : index
    %c0_7 = arith.constant 0 : index
    %8 = vector.load %arg6[%c0_6, %c0_7] : memref<8x128xf32, #tpu.memory_space<vmem>>, vector<8x128xf32>
    tpu.vector_store %arg6[%c0_6, %c0_7], %7 {strides = array<i32>} : memref<8x128xf32, #tpu.memory_space<vmem>>, vector<8x128xf32>,
    %c0_i32_8 = arith.constant 0 : i32
    %9 = arith.cmpi eq, %arg1, %c0_i32_8 : i32
    %10 = arith.extui %9 : i1 to i32
    %c0_i32_9 = arith.constant 0 : i32
    %11 = arith.cmpi ne, %10, %c0_i32_9 : i32
    scf.if %11 {
      %c0_10 = arith.constant 0 : index
      %c0_11 = arith.constant 0 : index
      %12 = vector.load %arg6[%c0_10, %c0_11] : memref<8x128xf32, #tpu.memory_space<vmem>>, vector<8x128xf32>
      %c0_12 = arith.constant 0 : index
      %c0_13 = arith.constant 0 : index
      %13 = vector.load %arg4[%c0_12, %c0_13] : memref<1x128xf32, #tpu.memory_space<vmem>>, vector<1x128xf32>
      %14 = vector.broadcast %13 : vector<1x128xf32> to vector<8x128xf32>
      %15 = arith.addf %12, %14 : vector<8x128xf32>
      %c0_14 = arith.constant 0 : index
      %c0_15 = arith.constant 0 : index
      %16 = vector.load %arg6[%c0_14, %c0_15] : memref<8x128xf32, #tpu.memory_space<vmem>>, vector<8x128xf32>
      tpu.vector_store %arg6[%c0_14, %c0_15], %15 {strides = array<i32>} : memref<8x128xf32, #tpu.memory_space<vmem>>, vector<8x128xf32>,
      %c0_16 = arith.constant 0 : index
      %c0_17 = arith.constant 0 : index
      %17 = vector.load %arg6[%c0_16, %c0_17] : memref<8x128xf32, #tpu.memory_space<vmem>>, vector<8x128xf32>
      %cst_18 = arith.constant dense<0xFF800000> : vector<8xf32>
      %18 = vector.multi_reduction <maximumf>, %17, %cst_18 [1] : vector<8x128xf32> to vector<8xf32>
      %19 = vector.shape_cast %18 : vector<8xf32> to vector<8x1xf32>
      %c0_19 = arith.constant 0 : index
      %c0_20 = arith.constant 0 : index
      %20 = vector.load %arg6[%c0_19, %c0_20] : memref<8x128xf32, #tpu.memory_space<vmem>>, vector<8x128xf32>
      %21 = vector.broadcast %19 : vector<8x1xf32> to vector<8x128xf32>
      %22 = arith.subf %20, %21 : vector<8x128xf32>
      %c0_21 = arith.constant 0 : index
      %c0_22 = arith.constant 0 : index
      %23 = vector.load %arg6[%c0_21, %c0_22] : memref<8x128xf32, #tpu.memory_space<vmem>>, vector<8x128xf32>
      tpu.vector_store %arg6[%c0_21, %c0_22], %22 {strides = array<i32>} : memref<8x128xf32, #tpu.memory_space<vmem>>, vector<8x128xf32>,
      %c0_23 = arith.constant 0 : index
      %c0_24 = arith.constant 0 : index
      %24 = vector.load %arg6[%c0_23, %c0_24] : memref<8x128xf32, #tpu.memory_space<vmem>>, vector<8x128xf32>
      %25 = math.exp %24 : vector<8x128xf32>
      %c0_25 = arith.constant 0 : index
      %c0_26 = arith.constant 0 : index
      %26 = vector.load %arg6[%c0_25, %c0_26] : memref<8x128xf32, #tpu.memory_space<vmem>>, vector<8x128xf32>
      tpu.vector_store %arg6[%c0_25, %c0_26], %25 {strides = array<i32>} : memref<8x128xf32, #tpu.memory_space<vmem>>, vector<8x128xf32>,
      %c0_27 = arith.constant 0 : index
      %c0_28 = arith.constant 0 : index
      %27 = vector.load %arg6[%c0_27, %c0_28] : memref<8x128xf32, #tpu.memory_space<vmem>>, vector<8x128xf32>
      %cst_29 = arith.constant dense<0.000000e+00> : vector<8xf32>
      %28 = vector.multi_reduction <add>, %27, %cst_29 [1] : vector<8x128xf32> to vector<8xf32>
      %29 = vector.shape_cast %28 : vector<8xf32> to vector<8x1xf32>
      %30 = tpu.reciprocal %29 {approx = true} : vector<8x1xf32> -> vector<8x1xf32>
      %31 = arith.mulf %29, %30 : vector<8x1xf32>
      %cst_30 = arith.constant 2.000000e+00 : f32
      %32 = vector.broadcast %cst_30 : f32 to vector<8x1xf32>
      %33 = arith.subf %32, %31 : vector<8x1xf32>
      %34 = arith.mulf %30, %33 : vector<8x1xf32>
      %35 = arith.mulf %29, %34 : vector<8x1xf32>
      %cst_31 = arith.constant 2.000000e+00 : f32
      %36 = vector.broadcast %cst_31 : f32 to vector<8x1xf32>
      %37 = arith.subf %36, %35 : vector<8x1xf32>
      %38 = arith.mulf %34, %37 : vector<8x1xf32>
      %c0_32 = arith.constant 0 : index
      %c0_33 = arith.constant 0 : index
      %39 = vector.load %arg6[%c0_32, %c0_33] : memref<8x128xf32, #tpu.memory_space<vmem>>, vector<8x128xf32>
      %40 = vector.broadcast %38 : vector<8x1xf32> to vector<8x128xf32>
      %41 = arith.mulf %39, %40 : vector<8x128xf32>
      %c0_34 = arith.constant 0 : index
      %c0_35 = arith.constant 0 : index
      %42 = vector.load %arg5[%c0_34, %c0_35] : memref<8x128xf32, #tpu.memory_space<vmem>>, vector<8x128xf32>
      tpu.vector_store %arg5[%c0_34, %c0_35], %41 {strides = array<i32>} : memref<8x128xf32, #tpu.memory_space<vmem>>, vector<8x128xf32>,
    } else {
    }
    return
  }
  func.func @transform_0(%arg0: i32, %arg1: i32) -> (i32, i32) {
    %c0_i32 = arith.constant 0 : i32
    return %arg0, %arg1 : i32, i32
  }
  func.func @transform_1(%arg0: i32, %arg1: i32) -> (i32, i32) {
    %c0_i32 = arith.constant 0 : i32
    %c0_i32_0 = arith.constant 0 : i32
    return %arg1, %c0_i32 : i32, i32
  }
  func.func @transform_2(%arg0: i32, %arg1: i32) -> (i32, i32) {
    %c0_i32 = arith.constant 0 : i32
    %c0_i32_0 = arith.constant 0 : i32
    %c0_i32_1 = arith.constant 0 : i32
    return %c0_i32, %c0_i32_0 : i32, i32
  }
  func.func @transform_3(%arg0: i32, %arg1: i32) -> (i32, i32) {
    %c0_i32 = arith.constant 0 : i32
    %c0_i32_0 = arith.constant 0 : i32
    return %arg0, %c0_i32 : i32, i32
  }
}

</mosaic_0001>

<bundles_post_ra>
// kernel: tpu_custom_call.1
= control target key start
LH: loop header
LB: loop body
LE: loop exit
PB: predicated region body
PF: predicated region fallthrough
CT: control target
= control target key end

     0   :  { %8 = vsyncpa [#allocation4], 0  ;;  %s906_s0 = inlined_call_operand.hbm [shape: f32[16,32], index: 0, kind: input, shape index: {}]   ;;  %s907_s1 = inlined_call_operand.hbm [shape: f32[32,128], index: 1, kind: input, shape index: {}]   ;;  %s908_s2 = inlined_call_operand.vmem [shape: f32[1,128], index: 2, kind: input, shape index: {}]   ;;  %s909_s3 = inlined_call_operand.hbm [shape: f32[16,128], index: 3, kind: output, shape index: {}]  }
   0x1   :  { %10 = vsyncpa [#allocation4 + $0x1], 0 }
   0x2   :  { %11 = vsyncpa [#allocation7], 0 }
   0x3   :  { %12 = vsyncpa [#allocation5], 0 }
   0x4   :  { %14 = vsyncpa [#allocation5 + $0x1], 0  ;;  %s732_s12 = smov 0   ;;  %s734_s13 = smov 0  }
   0x5   :  { %s736_s14 = smov 0   ;;  %s738_s15 = smov 0  }
   0x6   :  { %s740_s16 = smov 0   ;;  %s742_s17 = smov 0  }
   0x7 LB: > { %s451_s18 = sadd.s32 4294967295, %s703_s17   ;;  %s452_s19 = sadd.s32 4294967294, %s703_s17   ;;  %s703_s17 = sphi %s742_s17, %s20_s17   ;;  %s699_s16 = sphi %s740_s16, %s927_s16   ;;  %s695_s15 = sphi %s738_s15, %s926_s15   ;;  %s691_s14 = sphi %s736_s14, %s925_s14   ;;  %s687_s13 = sphi %s734_s13, %s924_s13   ;;  %s683_s12 = sphi %s732_s12, %s923_s12  }
   0x8   : > { %p54_p0 = scmp.ne.s32.totalorder %s687_s13, %s683_s12  ;;  %p766_p1 = scmp.eq.s32.totalorder %s451_s18, 0 }
   0x9   : > { %p770_p2 = scmp.eq.s32.totalorder %s451_s18, 1  ;;  %p131_p3 = scmp.eq.s32.totalorder %s452_s19, 1 }
   0xa   : > { %p776_p4 = por %p766_p1, %p54_p0  ;;  %p453_p5 = scmp.ge.s32.totalorder %s703_s17, 1 }
   0xb   : > { %p781_p6 = por %p131_p3, %p54_p0  ;;  %p138_p7 = scmp.lt.s32.totalorder %s703_s17, 3 }
   0xc   : > { %s913_s22 = scalar_select %p776_p4, 1, 0 }
   0xd   : > { %s914_s23 = scalar_select %p781_p6, 1, 0 }
   0xe   : > { %p786_p8 = pnand %p453_p5, %p138_p7  ;;  %s705_s25 = smov [#allocation6]  }
   0xf   : > { %s153_s26 = sshll.u32 %s705_s25, 4  ;;  %s32_s28 = sadd.s32 1, %s699_s16  ;;  %s154_s26 = int_to_ptr.vmem [resolvable:$true] %s153_s26 }
  0x10   : > { %p492_p9 = pneg %p786_p8  ;;  %s576_s29 = scalar_lea.vmem %s154_s26, 512 }
  0x11   : > { %p577_p13 = scmp.ne.s32.totalorder %s154_s26, %s576_s29  ;;  %p584_p5 = scmp.lt.s32.totalorder %s154_s26, %s154_s26 }
  0x12   : > { %p795_p11 = pnand %p492_p9, %p766_p1  ;;  %p585_p7 = scmp.lt.s32.totalorder %s576_s29, %s576_s29 }
  0x14   : > { %p567_p12 = pneg %p795_p11  ;;  %p586_p6 = por %p585_p7, %p584_p5 }
  0x16   : > { %p579_p0 = pnand %p577_p13, %p567_p12 }
  0x18   : > { %p580_p3 = pneg %p579_p0 }
  0x1a   : > { %p587_p4 = pnand %p586_p6, %p580_p3 }
  0x1c   : > { %590 = shalt.err (!%p587_p4)
}
  0x1d   : > { %s706_s30 = smov 128   ;;  %s707_s4 = smov 8  }
  0x1e   : > { %495 = dma.hbm_to_vmem [thread:$0]  (!%p795_p11), %s907_s1, 512, %s154_s26, [#allocation7], %s706_s30, %s706_s30, %s707_s4  }
  0x1f   : > { %p34_p6 = scmp.ge.s32.totalorder %s32_s28, 2  ;;  %s41_s7 = sadd.s32 1, %s691_s14 }
  0x20   : > { %p48_p4 = scmp.ne.s32.totalorder %s691_s14, %s687_s13  ;;  %p49_p9 = scmp.eq.s32.totalorder %s703_s17, 0 }
  0x21   : > { %s929_s28 = smov (%p34_p6, %s32_s28), 0  ;;  %p505_p0 = scmp.lt.s32.totalorder %s703_s17, 2 }
  0x22   : > { %p813_p12 = por %p49_p9, %p48_p4  ;;  %p819_p13 = por %p770_p2, %p48_p4 }
  0x23   : > { %s36_s10 = ssub.s32 %s699_s16, %s929_s28  ;;  %s170_s11 = sand.u32 1, %s691_s14  }
  0x24   : > { %p39_p11 = scmp.eq.s32.totalorder %s36_s10, 0  ;;  %s456_s18 = sshll.u32 %s170_s11, 3 }
  0x25   : > { %s457_s25 = sshll.u32 %s699_s16, 7  ;;  %s174_s30 = scalar_lea.vmem [#allocation3], %s456_s18 }
  0x26   : > { %s828_s19 = scalar_select %p39_p11, %s691_s14, %s41_s7  }
  0x27   : > { %s180_s29 = scalar_lea.hbm %s906_s0, %s457_s25  ;;  %s182_s4 = sshll.u32 %s174_s30, 4  ;;  %s183_s4 = int_to_ptr.vmem [resolvable:$true] %s182_s4 }
  0x28   : > { %p836_p2 = pnand %p505_p0, %p813_p12  ;;  %s171_s5 = scalar_lea.sflag [#allocation4], %s170_s11 }
  0x29   : > { %s604_s6 = scalar_lea.vmem %s183_s4, 128  ;;  %s708_s7 = smov [#allocation3]  }
  0x2a   : > { %p593_p3 = pneg %p836_p2  ;;  %p605_p5 = scmp.ne.s32.totalorder %s183_s4, %s604_s6 }
  0x2b   : > { %s609_s10 = sshll.u32 %s708_s7, 4  ;;  %s610_s10 = int_to_ptr.vmem [resolvable:$false] %s609_s10 }
  0x2c   : > { %p607_p7 = pnand %p605_p5, %p593_p3  ;;  %s611_s25 = scalar_lea.vmem %s610_s10, 256 }
  0x2d   : > { %p612_p4 = scmp.lt.s32.totalorder %s183_s4, %s610_s10  ;;  %p613_p9 = scmp.lt.s32.totalorder %s611_s25, %s604_s6 }
  0x2e   : > { %p608_p6 = pneg %p607_p7 }
  0x2f   : > { %p614_p11 = por %p613_p9, %p612_p4 }
  0x31   : > { %p615_p10 = pnand %p614_p11, %p608_p6 }
  0x33   : > { %618 = shalt.err (!%p615_p10)
}
  0x34   : > { %499 = dma.hbm_to_vmem [thread:$0]  (!%p836_p2), %s180_s29, 128, %s183_s4, %s171_s5  }
  0x35   : > { %191 = sbr.rel (%p786_p8) target bundleno = 600 (0x258), region = 32  ;;  %s847_s8 = sand.u32 (!%p786_p8), 1, %s687_s13  }
  0x36   : > { %s459_s11 = sshll.u32 (!%p786_p8), %s847_s8, 3  ;;  %s194_s18 = scalar_lea.sflag (!%p786_p8), [#allocation4], %s847_s8 }
  0x37   : > { %s197_s26 = scalar_lea.vmem (!%p786_p8), [#allocation3], %s459_s11  ;;  %p920_p12 = scmp.ne.s32.totalorder (!%p786_p8), %s913_s22, 0 }
  0x3a   : > { %670 = dma.done.wait (%p920_p12), %s194_s18, 128  }
  0x3b   : > { %672 = vsyncadd (%p920_p12), %s194_s18, 4294967168 }
  0x3c   : > { %674 = dma.done.wait (%p766_p1), [#allocation7], 512  }
  0x3d   : > { %676 = vsyncadd (%p766_p1), [#allocation7], 4294966784  ;;  %v709_v0 = vmov 0.0   ;;  %vm710_vm0 = vmmov 0   ;;  %v235_v1 = vld [vmem:[#allocation6 + $0x18] sm:$0xff]  ;;  %v234_v2 = vld [vmem:[#allocation6 + $0x10] sm:$0xff] }
  0x3e   : > { %473 = vmatprep.subr.mxu0 %v709_v0  ;;  %481 = vmatprep.mubr.msk.f32.mxu0 %vm710_vm0, %v709_v0  ;;  %v233_v3 = vld [vmem:[#allocation6 + $0x8] sm:$0xff]  ;;  %v232_v4 = vld [vmem:[#allocation6] sm:$0xff]  ;;  %v231_v5 = vld [vmem:[%s197_s26] sm:$0xff]  ;;  %vm236_vm1 = vcmask 261120   ;;  %s465_s24 = sshll.u32 %s695_s15, 7  ;;  %s223_s27 = scalar_lea.vmem [#allocation8], %s459_s11 }
  0x3f   : > { %474 = vmatpush3.msra.mxu0 %v235_v1  ;;  %v463_v6 = vld [vmem:[%s908_s2] ss:$0 sm:$0xff]  ;;  %s360_s29 = sshll.u32 %s223_s27, 4  ;;  %s358_s21 = scalar_lea.hbm %s909_s3, %s465_s24  ;;  %s361_s29 = int_to_ptr.vmem [resolvable:$true] %s360_s29 }
  0x40   : > { %475 = vmatprep.subr.mxu0 %v709_v0  ;;  %s347_s5 = scalar_lea.sflag [#allocation5], %s847_s8  ;;  %s619_s6 = scalar_lea.vmem %s361_s29, 128 }
  0x41   : > { %476 = vmatpush3.msra.mxu0 %v234_v2  ;;  %p620_p1 = scmp.ne.s32.totalorder %s361_s29, %s619_s6  ;;  %s711_s7 = smov [#allocation8]  }
  0x42   : > { %477 = vmatprep.subr.mxu0 %v709_v0  ;;  %s623_s10 = sshll.u32 %s711_s7, 4  ;;  %s624_s10 = int_to_ptr.vmem [resolvable:$false] %s623_s10 }
  0x43   : > { %478 = vmatpush3.msra.mxu0 %v233_v3  ;;  %p621_p8 = pnand %p620_p1, %p819_p13  ;;  %s625_s15 = scalar_lea.vmem %s624_s10, 256 }
  0x44   : > { %479 = vmatprep.subr.mxu0 %v709_v0  ;;  %p626_p0 = scmp.lt.s32.totalorder %s361_s29, %s624_s10  ;;  %p627_p2 = scmp.lt.s32.totalorder %s625_s15, %s619_s6 }
  0x45   : > { %480 = vmatpush3.msra.mxu0 %v232_v4  ;;  %p622_p10 = pneg %p621_p8 }
  0x46   : > { %482 = vmatmul.mubr.msk.f32.vlgmr.msra.gmra.mxu0 %vm236_vm1, %v231_v5  ;;  %p628_p3 = por %p627_p2, %p626_p0 }
  0x48   : > { %p629_p5 = pnand %p628_p3, %p622_p10 }
 0x106   : > { %v306_v7 = vpop.f32.mrf.mxu0 }
 0x107   : > { %v323_v8 = vadd.f32 %v463_v6, %v306_v7 }
 0x108   : > { %v483_v9 = vpop.f32.mrf.mxu0 }
 0x109   : > { %326 = vmax.xlane.f32.xlu0 %v323_v8 }
 0x192   : > { %v327_v10 = vpop.xlane.xlu0 %326 }
 0x193   : > { %v328_v11 = vsub.f32 %v323_v8, %v327_v10 }
 0x195   : > { %v331_v12 = vmul.f32 1.442695, %v328_v11 }
 0x197   : > { %561 = vpow2.f32 %v331_v12 }
 0x1a4   : > { %v562_v13 = vpop.eup %561 }
 0x1a5   : > { %335 = vadd.xlane.f32.xlu0 %v562_v13 }
 0x22e   : > { %v336_v14 = vpop.xlane.xlu0 %335 }
 0x22f   : > { %563 = vrcp.f32 %v336_v14 }
 0x23c   : > { %v564_v15 = vpop.eup %563 }
 0x23d   : > { %v338_v16 = vmul.f32 %v564_v15, %v336_v14 }
 0x23f   : > { %v339_v17 = vsub.f32 2.0, %v338_v16 }
 0x241   : > { %v340_v18 = vmul.f32 %v564_v15, %v339_v17 }
 0x243   : > { %v341_v19 = vmul.f32 %v340_v18, %v336_v14 }
 0x245   : > { %v342_v20 = vsub.f32 2.0, %v341_v19 }
 0x247   : > { %v343_v21 = vmul.f32 %v342_v20, %v340_v18 }
 0x249   : > { %v344_v22 = vmul.f32 %v562_v13, %v343_v21 }
 0x24b   : > { %345 = vst [vmem:[%s223_s27] sm:$0xff] %v344_v22 }
 0x24c   : > { %632 = shalt.err (!%p629_p5)
}
 0x24d   : > { %s633_s25 = scalar_lea.hbm %s358_s21, 128  ;;  %s637_s18 = scalar_lea.hbm %s909_s3, 256 }
 0x24e   : > { %p634_p7 = scmp.ne.s32.totalorder %s358_s21, %s633_s25  ;;  %p638_p9 = scmp.lt.s32.totalorder %s358_s21, %s909_s3 }
 0x24f   : > { %p639_p11 = scmp.lt.s32.totalorder %s637_s18, %s633_s25 }
 0x250   : > { %p635_p6 = pnand %p634_p7, %p819_p13 }
 0x251   : > { %p640_p12 = por %p639_p11, %p638_p9 }
 0x252   : > { %p636_p4 = pneg %p635_p6 }
 0x254   : > { %p641_p1 = pnand %p640_p12, %p636_p4 }
 0x256   : > { %644 = shalt.err (!%p641_p1)
}
 0x257   : > { %490 = dma.vmem_to_hbm [thread:$0]  (%p819_p13), %s361_s29, 128, %s358_s21, %s347_s5  }
 0x258 PF: > { %s372_s22 = sand.u32 1, %s683_s12   ;;  %p921_p8 = scmp.ne.s32.totalorder %s914_s23, 0 }
 0x259   : > { %p922_p10 = scmp.ge.s32.totalorder %s703_s17, 2  ;;  %s373_s24 = scalar_lea.sflag [#allocation5], %s372_s22 }
 0x25b   : > { %p501_p0 = pnand %p922_p10, %p921_p8 }
 0x25d   : > { %p502_p2 = pneg %p501_p0 }
 0x25f   : > { %678 = dma.done.wait (%p502_p2), %s373_s24, 128  }
 0x260   : > { %680 = vsyncadd (%p502_p2), %s373_s24, 4294967168  ;;  %s20_s17 = sadd.s32 1, %s703_s17   ;;  %s923_s12 = smov %s687_s13 }
 0x261   : > { %p17_p3 = scmp.ge.s32.totalorder %s20_s17, 4   ;;  %s924_s13 = smov %s691_s14 }
 0x262   : > { %s925_s14 = smov %s828_s19  ;;  %s926_s15 = smov %s699_s16 }
 0x263   : > { %s927_s16 = smov %s929_s28  ;;  %19 = sbr.rel (!%p17_p3) target bundleno = 7 (0x7), region = 90 }
 0x268   :  { %378 = vsyncpa [#allocation4], 1 }
 0x269   :  { %380 = vsyncpa [#allocation4 + $0x1], 1 }
 0x26a   :  { %381 = vsyncpa [#allocation7], 1 }
 0x26b   :  { %382 = vsyncpa [#allocation5], 1 }
 0x26c   :  { %384 = vsyncpa [#allocation5 + $0x1], 1 }

</bundles_post_ra>
